<compile_context>
chip_gen: v7x
topology: tpu7x:2x2x1
jax: 0.10.0
libtpu: 0.0.40
codegen_flags: <defaults>
</compile_context>

<pallas_src>
import jax
import jax.numpy as jnp
from jax.experimental import pallas as pl
from jax.experimental.pallas import tpu as pltpu

# ----------------------------- problem sizes ---------------------------------
B = 2            # batch
S = 8            # input sequence length
P = 4            # number of soft-prompt tokens
H = 32           # logical hidden size
V = 64           # logical vocab size
T = P + S        # total sequence length after prompt prepend
N = B * T        # flattened token count

H_PAD = 128      # lane-padded hidden size
V_PAD = 128      # lane-padded vocab size

# Token-tile rows per grid step: biggest sublane-aligned tile (capped at 256)
# that covers the problem -> 1 grid step for the tiny example, 256-row
# double-buffered tiles for large N.
TN = min(256, 8 * pl.cdiv(N, 8))
N_PAD = TN * pl.cdiv(N, TN)
GRID = N_PAD // TN

IGNORE_INDEX = -100
NEG_INF = -1e30


# ------------------------------- Pallas kernel --------------------------------
def _lm_kernel(x_ref, w_ref, et_ref, labels_ref, logits_ref, stats_ref):
    """Synthetic-LM hot path for one token tile.

    x_ref      : (TN, H_PAD)    bf16  token embeddings (soft prompt prepended)
    w_ref      : (H_PAD, H_PAD) bf16  MLP weight (zero-padded, grid-resident)
    et_ref     : (H_PAD, V_PAD) bf16  tied LM head (zero-padded, grid-resident)
    labels_ref : (TN, 1)        i32   labels (-100 = ignore; mask already folded in)
    logits_ref : (TN, V_PAD)    f32   output logits tile (lane-dense store)
    stats_ref  : (8, 128)       f32   per-tile [loss_sum @ (0,0), count @ (0,1)]
    """
    x = x_ref[...]                                              # (TN, H_PAD) bf16
    h = jax.nn.gelu(jnp.dot(x, w_ref[...],
                            preferred_element_type=jnp.float32))   # f32
    logits = jnp.dot(h.astype(jnp.bfloat16), et_ref[...],
                     preferred_element_type=jnp.float32)        # (TN, V_PAD) f32
    logits_ref[...] = logits                                    # unmasked vst

    # log-softmax cross-entropy; exclude padded vocab columns from the LSE.
    vocab = jax.lax.broadcasted_iota(jnp.int32, logits.shape, 1)
    masked = jnp.where(vocab < V, logits, NEG_INF)
    m = jnp.max(masked, axis=-1, keepdims=True)
    lse = jnp.log(jnp.sum(jnp.exp(masked - m), axis=-1, keepdims=True)) + m

    labels = labels_ref[...]                                    # (TN, 1) i32
    label_logit = jnp.sum(jnp.where(vocab == labels, logits, 0.0),
                          axis=-1, keepdims=True)               # (TN, 1)
    nll = lse - label_logit                                     # (TN, 1)

    valid = labels >= 0                                         # mask folded in
    loss_part = jnp.sum(jnp.where(valid, nll, 0.0))
    cnt_part = jnp.sum(valid.astype(jnp.float32))

    row = jax.lax.broadcasted_iota(jnp.int32, (8, 128), 0)
    lane = jax.lax.broadcasted_iota(jnp.int32, (8, 128), 1)
    stats_ref[...] = jnp.where(jnp.logical_and(row == 0, lane == 0), loss_part,
                     jnp.where(jnp.logical_and(row == 0, lane == 1), cnt_part,
                               0.0))


def _run_lm_kernel(x_bf16, w_bf16, et_bf16, labels_i32):
    cost = pl.CostEstimate(
        flops=2 * N_PAD * H_PAD * H_PAD + 2 * N_PAD * H_PAD * V_PAD,
        transcendentals=N_PAD * (H_PAD + V_PAD),
        bytes_accessed=(x_bf16.size * 2 + w_bf16.size * 2 + et_bf16.size * 2
                        + labels_i32.size * 4
                        + N_PAD * V_PAD * 4 + GRID * 8 * 128 * 4),
    )
    return pl.pallas_call(
        _lm_kernel,
        out_shape=(
            jax.ShapeDtypeStruct((N_PAD, V_PAD), jnp.float32),
            jax.ShapeDtypeStruct((GRID, 8, 128), jnp.float32),
        ),
        grid=(GRID,),
        in_specs=[
            pl.BlockSpec((TN, H_PAD), lambda i: (i, 0)),      # x tile
            pl.BlockSpec((H_PAD, H_PAD), lambda i: (0, 0)),   # w (resident)
            pl.BlockSpec((H_PAD, V_PAD), lambda i: (0, 0)),   # lm head (resident)
            pl.BlockSpec((TN, 1), lambda i: (i, 0)),          # labels tile
        ],
        out_specs=(
            pl.BlockSpec((TN, V_PAD), lambda i: (i, 0)),          # logits tile
            pl.BlockSpec((None, 8, 128), lambda i: (i, 0, 0)),    # per-tile stats
        ),
        compiler_params=pltpu.CompilerParams(
            dimension_semantics=("parallel",),
            vmem_limit_bytes=32 * 1024 * 1024),
        cost_estimate=cost,
    )(x_bf16, w_bf16, et_bf16, labels_i32)


# --------------------------- PromptTuning forward -----------------------------
def prompt_tuning_forward(params, input_ids, attention_mask, output_ids):
    """JAX/Pallas equivalent of PromptTuning.forward.

    Returns (loss, logits) where logits has shape (B, P+S, V).
    """
    emb_table = params["embedding"]       # (V, H) f32
    soft_prompt = params["soft_prompt"]   # (P, H) f32
    w_mlp = params["w_mlp"]               # (H, H) f32

    bsz = input_ids.shape[0]

    # soft_prompt = self.soft_prompt_embedding(batch_size)
    soft = jnp.broadcast_to(soft_prompt[None, :, :], (bsz, P, H))

    # input_embeddings = model.get_input_embeddings()(input_ids)
    inp_emb = jnp.take(emb_table, input_ids, axis=0)            # (B, S, H)

    # concat along dim=1
    x = jnp.concatenate([soft, inp_emb], axis=1)                # (B, T, H)

    # prompt_attention_mask = ones(B, P); concat with attention_mask,
    # then fold the mask into the labels (masked tokens -> ignore_index).
    prompt_mask = jnp.ones((bsz, P), dtype=attention_mask.dtype)
    full_mask = jnp.concatenate([prompt_mask, attention_mask], axis=1)  # (B, T)

    prompt_labels = jnp.full((bsz, P), IGNORE_INDEX, dtype=jnp.int32)
    labels = jnp.concatenate([prompt_labels, output_ids.astype(jnp.int32)],
                             axis=1)                            # (B, T)
    labels = jnp.where(full_mask > 0, labels, IGNORE_INDEX)

    # flatten + pad to lane-dense, token-tiled layout for the kernel
    n = bsz * T
    pad_n = N_PAD - n
    x_flat = x.reshape(n, H).astype(jnp.float32)
    x_flat = jnp.pad(x_flat, ((0, pad_n), (0, H_PAD - H)))
    labels_flat = labels.reshape(n, 1)
    labels_flat = jnp.pad(labels_flat, ((0, pad_n), (0, 0)),
                          constant_values=IGNORE_INDEX)

    w_pad = jnp.pad(w_mlp, ((0, H_PAD - H), (0, H_PAD - H)))
    et_pad = jnp.pad(emb_table.T, ((0, H_PAD - H), (0, V_PAD - V)))

    logits_pad, stats = _run_lm_kernel(
        x_flat.astype(jnp.bfloat16),
        w_pad.astype(jnp.bfloat16),
        et_pad.astype(jnp.bfloat16),
        labels_flat,
    )

    loss_sum = jnp.sum(stats[:, 0, 0])
    cnt = jnp.sum(stats[:, 0, 1])
    loss = loss_sum / jnp.maximum(cnt, 1.0)
    logits = logits_pad[:n, :V].reshape(bsz, T, V)
    return loss, logits


# --------------------------- pure-JAX reference -------------------------------
def _ref_forward(params, input_ids, attention_mask, output_ids):
    emb, sp, w = params["embedding"], params["soft_prompt"], params["w_mlp"]
    bsz = input_ids.shape[0]
    x = jnp.concatenate([jnp.broadcast_to(sp[None], (bsz, P, H)),
                         jnp.take(emb, input_ids, axis=0)], axis=1)
    h = jax.nn.gelu(x @ w)
    logits = h @ emb.T                                           # (B, T, V)
    mask = jnp.concatenate([jnp.ones((bsz, P), attention_mask.dtype),
                            attention_mask], axis=1)
    labels = jnp.concatenate([jnp.full((bsz, P), IGNORE_INDEX, jnp.int32),
                              output_ids.astype(jnp.int32)], axis=1)
    labels = jnp.where(mask > 0, labels, IGNORE_INDEX)
    valid = labels >= 0
    lse = jax.scipy.special.logsumexp(logits, axis=-1)
    picked = jnp.take_along_axis(
        logits, jnp.clip(labels, 0, V - 1)[..., None], axis=-1)[..., 0]
    nll = lse - picked
    loss = (jnp.sum(jnp.where(valid, nll, 0.0))
            / jnp.maximum(jnp.sum(valid.astype(jnp.float32)), 1.0))
    return loss, logits


# --------------------------------- main ---------------------------------------
if __name__ == "__main__":
    key = jax.random.PRNGKey(0)
    k_emb, k_sp, k_w, k_ids, k_out = jax.random.split(key, 5)

    params = {
        "embedding": jax.random.normal(k_emb, (V, H), jnp.float32) * 0.02,
        "soft_prompt": jax.random.normal(k_sp, (P, H), jnp.float32) * 0.02,
        "w_mlp": jax.random.normal(k_w, (H, H), jnp.float32) * 0.05,
    }

    input_ids = jax.random.randint(k_ids, (B, S), 0, V, dtype=jnp.int32)
    output_ids = jax.random.randint(k_out, (B, S), 0, V, dtype=jnp.int32)
    # deterministic attention mask: last token of batch element 1 is padding
    attention_mask = jnp.ones((B, S), dtype=jnp.float32).at[1, -1].set(0.0)

    loss, logits = jax.jit(prompt_tuning_forward)(
        params, input_ids, attention_mask, output_ids)
    jax.block_until_ready((loss, logits))

    assert logits.shape == (B, T, V), logits.shape
    assert bool(jnp.isfinite(loss)), loss

    # sanity check against the f32 pure-JAX reference (kernel uses bf16 MXU
    # operands, so use loose tolerances)
    ref_loss, ref_logits = _ref_forward(params, input_ids, attention_mask,
                                        output_ids)
    assert jnp.allclose(loss, ref_loss, atol=2e-2, rtol=2e-2), (loss, ref_loss)
    assert jnp.allclose(logits, ref_logits, atol=5e-3, rtol=5e-2)

    print("KERNEL_OK")
</pallas_src>

<mosaic_0001>
module attributes {stable_mosaic.version = 11 : i64} {
  func.func @_lm_kernel(%arg0: i32, %arg1: memref<24x128xbf16, #tpu.memory_space<vmem>>, %arg2: memref<128x128xbf16, #tpu.memory_space<vmem>>, %arg3: memref<128x128xbf16, #tpu.memory_space<vmem>>, %arg4: memref<24x1xi32, #tpu.memory_space<vmem>>, %arg5: memref<24x128xf32, #tpu.memory_space<vmem>>, %arg6: memref<1x8x128xf32, #tpu.memory_space<vmem>>) attributes {dimension_semantics = [#tpu.dimension_semantics<parallel>], iteration_bounds = array<i64: 1>, scalar_prefetch = 0 : i64, scratch_operands = 0 : i64, tpu.core_type = #tpu.core_type<tc>, window_params = [{transform_indices = @transform_0, window_bounds = array<i64: 24, 128>}, {pipeline_mode = #tpu.pipeline_mode<synchronous>, transform_indices = @transform_1, window_bounds = array<i64: 128, 128>}, {pipeline_mode = #tpu.pipeline_mode<synchronous>, transform_indices = @transform_2, window_bounds = array<i64: 128, 128>}, {transform_indices = @transform_3, window_bounds = array<i64: 24, 1>}, {transform_indices = @transform_4, window_bounds = array<i64: 24, 128>}, {transform_indices = @transform_5, window_bounds = array<i64: 1, 8, 128>}]} {
    %c0 = arith.constant 0 : index
    %c0_0 = arith.constant 0 : index
    %0 = vector.load %arg1[%c0, %c0_0] : memref<24x128xbf16, #tpu.memory_space<vmem>>, vector<24x128xbf16>
    %c0_1 = arith.constant 0 : index
    %c0_2 = arith.constant 0 : index
    %1 = vector.load %arg2[%c0_1, %c0_2] : memref<128x128xbf16, #tpu.memory_space<vmem>>, vector<128x128xbf16>
    %cst = arith.constant dense<0.000000e+00> : vector<24x128xf32>
    %2 = tpu.matmul %0, %1, %cst {dimension_numbers = #tpu.dot_dimension_numbers<[1], [0], [0], [1], [0, 0, 1, 1], [], []>} : vector<24x128xbf16>, vector<128x128xbf16>, vector<24x128xf32> -> vector<24x128xf32>
    %3 = arith.mulf %2, %2 : vector<24x128xf32>
    %4 = arith.mulf %2, %3 : vector<24x128xf32>
    %cst_3 = arith.constant 4.471500e-02 : f32
    %5 = vector.broadcast %cst_3 : f32 to vector<24x128xf32>
    %6 = arith.mulf %5, %4 : vector<24x128xf32>
    %7 = arith.addf %2, %6 : vector<24x128xf32>
    %cst_4 = arith.constant 0.797884583 : f32
    %8 = vector.broadcast %cst_4 : f32 to vector<24x128xf32>
    %9 = arith.mulf %8, %7 : vector<24x128xf32>
    %10 = math.tanh %9 : vector<24x128xf32>
    %cst_5 = arith.constant 1.000000e+00 : f32
    %11 = vector.broadcast %cst_5 : f32 to vector<24x128xf32>
    %12 = arith.addf %11, %10 : vector<24x128xf32>
    %cst_6 = arith.constant 5.000000e-01 : f32
    %13 = vector.broadcast %cst_6 : f32 to vector<24x128xf32>
    %14 = arith.mulf %13, %12 : vector<24x128xf32>
    %15 = arith.mulf %2, %14 : vector<24x128xf32>
    %16 = arith.truncf %15 : vector<24x128xf32> to vector<24x128xbf16>
    %c0_7 = arith.constant 0 : index
    %c0_8 = arith.constant 0 : index
    %17 = vector.load %arg3[%c0_7, %c0_8] : memref<128x128xbf16, #tpu.memory_space<vmem>>, vector<128x128xbf16>
    %cst_9 = arith.constant dense<0.000000e+00> : vector<24x128xf32>
    %18 = tpu.matmul %16, %17, %cst_9 {dimension_numbers = #tpu.dot_dimension_numbers<[1], [0], [0], [1], [0, 0, 1, 1], [], []>} : vector<24x128xbf16>, vector<128x128xbf16>, vector<24x128xf32> -> vector<24x128xf32>
    %c0_10 = arith.constant 0 : index
    %c0_11 = arith.constant 0 : index
    %19 = vector.load %arg5[%c0_10, %c0_11] : memref<24x128xf32, #tpu.memory_space<vmem>>, vector<24x128xf32>
    tpu.vector_store %arg5[%c0_10, %c0_11], %18 {strides = array<i32>} : memref<24x128xf32, #tpu.memory_space<vmem>>, vector<24x128xf32>,
    %20 = tpu.iota {dimensions = array<i32: 1>} : vector<24x128xi32>
    %c64_i32 = arith.constant 64 : i32
    %21 = vector.broadcast %c64_i32 : i32 to vector<24x128xi32>
    %22 = arith.cmpi slt, %20, %21 : vector<24x128xi32>
    %cst_12 = arith.constant -1.000000e+30 : f32
    %23 = vector.broadcast %cst_12 : f32 to vector<24x128xf32>
    %24 = arith.select %22, %18, %23 : vector<24x128xi1>, vector<24x128xf32>
    %cst_13 = arith.constant dense<0xFF800000> : vector<24xf32>
    %25 = vector.multi_reduction <maximumf>, %24, %cst_13 [1] : vector<24x128xf32> to vector<24xf32>
    %26 = vector.shape_cast %25 : vector<24xf32> to vector<24x1xf32>
    %27 = vector.broadcast %26 : vector<24x1xf32> to vector<24x128xf32>
    %28 = arith.subf %24, %27 : vector<24x128xf32>
    %29 = math.exp %28 : vector<24x128xf32>
    %cst_14 = arith.constant dense<0.000000e+00> : vector<24xf32>
    %30 = vector.multi_reduction <add>, %29, %cst_14 [1] : vector<24x128xf32> to vector<24xf32>
    %31 = vector.shape_cast %30 : vector<24xf32> to vector<24x1xf32>
    %32 = math.log %31 : vector<24x1xf32>
    %33 = arith.addf %32, %26 : vector<24x1xf32>
    %c0_15 = arith.constant 0 : index
    %c0_16 = arith.constant 0 : index
    %34 = vector.load %arg4[%c0_15, %c0_16] : memref<24x1xi32, #tpu.memory_space<vmem>>, vector<24x1xi32>
    %35 = vector.broadcast %34 : vector<24x1xi32> to vector<24x128xi32>
    %36 = arith.cmpi eq, %20, %35 : vector<24x128xi32>
    %cst_17 = arith.constant 0.000000e+00 : f32
    %37 = vector.broadcast %cst_17 : f32 to vector<24x128xf32>
    %38 = arith.select %36, %18, %37 : vector<24x128xi1>, vector<24x128xf32>
    %cst_18 = arith.constant dense<0.000000e+00> : vector<24xf32>
    %39 = vector.multi_reduction <add>, %38, %cst_18 [1] : vector<24x128xf32> to vector<24xf32>
    %40 = vector.shape_cast %39 : vector<24xf32> to vector<24x1xf32>
    %41 = arith.subf %33, %40 : vector<24x1xf32>
    %c0_i32 = arith.constant 0 : i32
    %42 = vector.broadcast %c0_i32 : i32 to vector<24x1xi32>
    %43 = arith.cmpi sge, %34, %42 : vector<24x1xi32>
    %cst_19 = arith.constant 0.000000e+00 : f32
    %44 = vector.broadcast %cst_19 : f32 to vector<24x1xf32>
    %45 = arith.select %43, %41, %44 : vector<24x1xi1>, vector<24x1xf32>
    %46 = vector.shape_cast %45 : vector<24x1xf32> to vector<1x24x1xf32>
    %cst_20 = arith.constant dense<0.000000e+00> : vector<1xf32>
    %47 = vector.multi_reduction <add>, %46, %cst_20 [1, 2] : vector<1x24x1xf32> to vector<1xf32>
    %48 = vector.shape_cast %47 : vector<1xf32> to vector<1x1x1xf32>
    %49 = vector.extract %48[0, 0, 0] : f32 from vector<1x1x1xf32>
    %50 = arith.extui %43 : vector<24x1xi1> to vector<24x1xi32>
    %51 = arith.sitofp %50 : vector<24x1xi32> to vector<24x1xf32>
    %52 = vector.shape_cast %51 : vector<24x1xf32> to vector<1x24x1xf32>
    %cst_21 = arith.constant dense<0.000000e+00> : vector<1xf32>
    %53 = vector.multi_reduction <add>, %52, %cst_21 [1, 2] : vector<1x24x1xf32> to vector<1xf32>
    %54 = vector.shape_cast %53 : vector<1xf32> to vector<1x1x1xf32>
    %55 = vector.extract %54[0, 0, 0] : f32 from vector<1x1x1xf32>
    %56 = tpu.iota {dimensions = array<i32: 0>} : vector<8x128xi32>
    %57 = tpu.iota {dimensions = array<i32: 1>} : vector<8x128xi32>
    %c0_i32_22 = arith.constant 0 : i32
    %58 = vector.broadcast %c0_i32_22 : i32 to vector<8x128xi32>
    %59 = arith.cmpi eq, %56, %58 : vector<8x128xi32>
    %c0_i32_23 = arith.constant 0 : i32
    %60 = vector.broadcast %c0_i32_23 : i32 to vector<8x128xi32>
    %61 = arith.cmpi eq, %57, %60 : vector<8x128xi32>
    %62 = arith.andi %59, %61 : vector<8x128xi1>
    %c0_i32_24 = arith.constant 0 : i32
    %63 = vector.broadcast %c0_i32_24 : i32 to vector<8x128xi32>
    %64 = arith.cmpi eq, %56, %63 : vector<8x128xi32>
    %c1_i32 = arith.constant 1 : i32
    %65 = vector.broadcast %c1_i32 : i32 to vector<8x128xi32>
    %66 = arith.cmpi eq, %57, %65 : vector<8x128xi32>
    %67 = arith.andi %64, %66 : vector<8x128xi1>
    %cst_25 = arith.constant 0.000000e+00 : f32
    %68 = vector.broadcast %55 : f32 to vector<8x128xf32>
    %69 = vector.broadcast %cst_25 : f32 to vector<8x128xf32>
    %70 = arith.select %67, %68, %69 : vector<8x128xi1>, vector<8x128xf32>
    %71 = vector.broadcast %49 : f32 to vector<8x128xf32>
    %72 = arith.select %62, %71, %70 : vector<8x128xi1>, vector<8x128xf32>
    %c0_26 = arith.constant 0 : index
    %c0_27 = arith.constant 0 : index
    %c0_28 = arith.constant 0 : index
    %73 = vector.load %arg6[%c0_26, %c0_27, %c0_28] : memref<1x8x128xf32, #tpu.memory_space<vmem>>, vector<1x8x128xf32>
    %74 = vector.shape_cast %73 : vector<1x8x128xf32> to vector<8x128xf32>
    %75 = vector.shape_cast %72 : vector<8x128xf32> to vector<1x8x128xf32>
    tpu.vector_store %arg6[%c0_26, %c0_27, %c0_28], %75 {strides = array<i32>} : memref<1x8x128xf32, #tpu.memory_space<vmem>>, vector<1x8x128xf32>,
    return
  }
  func.func @transform_0(%arg0: i32) -> (i32, i32) {
    %c0_i32 = arith.constant 0 : i32
    %c0_i32_0 = arith.constant 0 : i32
    return %arg0, %c0_i32 : i32, i32
  }
  func.func @transform_1(%arg0: i32) -> (i32, i32) {
    %c0_i32 = arith.constant 0 : i32
    %c0_i32_0 = arith.constant 0 : i32
    %c0_i32_1 = arith.constant 0 : i32
    return %c0_i32, %c0_i32_0 : i32, i32
  }
  func.func @transform_2(%arg0: i32) -> (i32, i32) {
    %c0_i32 = arith.constant 0 : i32
    %c0_i32_0 = arith.constant 0 : i32
    %c0_i32_1 = arith.constant 0 : i32
    return %c0_i32, %c0_i32_0 : i32, i32
  }
  func.func @transform_3(%arg0: i32) -> (i32, i32) {
    %c0_i32 = arith.constant 0 : i32
    %c0_i32_0 = arith.constant 0 : i32
    return %arg0, %c0_i32 : i32, i32
  }
  func.func @transform_4(%arg0: i32) -> (i32, i32) {
    %c0_i32 = arith.constant 0 : i32
    %c0_i32_0 = arith.constant 0 : i32
    return %arg0, %c0_i32 : i32, i32
  }
  func.func @transform_5(%arg0: i32) -> (i32, i32, i32) {
    %c0_i32 = arith.constant 0 : i32
    %c0_i32_0 = arith.constant 0 : i32
    %c0_i32_1 = arith.constant 0 : i32
    return %arg0, %c0_i32, %c0_i32_0 : i32, i32, i32
  }
}

</mosaic_0001>

<bundles_post_ra>
// kernel: prompt_tuning_forward.1
= control target key start
LH: loop header
LB: loop body
LE: loop exit
PB: predicated region body
PF: predicated region fallthrough
CT: control target
= control target key end

     0   :  { %v538_v51 = vmov 0   ;;  %v289_v52 = vlaneseq  ;;  %vm358_vm7 = vcmask 7168   ;;  %s667_s1 = inlined_call_operand.vmem [shape: bf16[128,128], index: 1, kind: input, shape index: {}]   ;;  %s668_s0 = inlined_call_operand.vmem [shape: bf16[24,128], index: 0, kind: input, shape index: {}]   ;;  %s669_s2 = inlined_call_operand.vmem [shape: bf16[128,128], index: 2, kind: input, shape index: {}]   ;;  %s670_s4 = inlined_call_operand.vmem [shape: f32[24,128], index: 4, kind: output, shape index: {0}]   ;;  %s671_s3 = inlined_call_operand.vmem [shape: s32[24,1], index: 3, kind: input, shape index: {}]   ;;  %s672_s5 = inlined_call_operand.vmem [shape: f32[1,8,128], index: 5, kind: output, shape index: {1}]  }
   0x1   :  { %v502_v0 = vld [vmem:[%s667_s1] sm:$0xff]   ;;  %v503_v1 = vld [vmem:[%s667_s1 + $0x8] sm:$0xff]   ;;  %v504_v2 = vld [vmem:[%s667_s1 + $0x10] sm:$0xff]   ;;  %500 = vset.pattern.permute.xlu1 %v538_v51  ;;  %501 = vset.pattern.permute.xlu0 %v538_v51 }
   0x2   :  { %454 = vmatprep.subr.bf16.mxu0 %v502_v0  ;;  %v505_v3 = vld [vmem:[%s667_s1 + $0x18] sm:$0xff]   ;;  %v510_v4 = vld [vmem:[%s668_s0] sm:$0xff]   ;;  %v507_v6 = vld [vmem:[%s667_s1 + $0x28] sm:$0xff]   ;;  %v625_v53 = vand.u32 127, %v289_v52 }
   0x3   :  { %455 = vmatpush3.bf16.msra.mxu0 %v502_v0  ;;  %470 = vmatprep.mubr.bf16.mxu0 %v510_v4  ;;  %v506_v5 = vld [vmem:[%s667_s1 + $0x20] sm:$0xff]   ;;  %v508_v7 = vld [vmem:[%s667_s1 + $0x30] sm:$0xff]   ;;  %v509_v8 = vld [vmem:[%s667_s1 + $0x38] sm:$0xff]  }
   0x4   :  { %456 = vmatprep.subr.bf16.mxu0 %v503_v1  ;;  %v511_v9 = vld [vmem:[%s668_s0 + $0x8] ss:$0 sps:$4 sm:$0xff]   ;;  %v512_v10 = vld [vmem:[%s669_s2] sm:$0xff]   ;;  %v514_v12 = vld [vmem:[%s669_s2 + $0x10] sm:$0xff]   ;;  %vm291_vm0 = vcmp.lt.s32.totalorder %v625_v53, 64  ;;  %vm398_vm9 = vcmp.eq.s32.totalorder %v625_v53, 1 }
   0x5   :  { %474 = vmatprep.subr.bf16.mxu1 %v512_v10  ;;  %v513_v11 = vld [vmem:[%s669_s2 + $0x8] sm:$0xff]   ;;  %v515_v13 = vld [vmem:[%s669_s2 + $0x18] sm:$0xff]   ;;  %v516_v14 = vld [vmem:[%s669_s2 + $0x20] sm:$0xff]   ;;  %vm396_vm10 = vcmp.eq.s32.totalorder %v625_v53, 0 }
   0x6   :  { %475 = vmatpush3.bf16.msra.mxu1 %v512_v10  ;;  %v517_v15 = vld [vmem:[%s669_s2 + $0x28] sm:$0xff]   ;;  %v518_v16 = vld [vmem:[%s669_s2 + $0x30] sm:$0xff]   ;;  %v519_v17 = vld [vmem:[%s669_s2 + $0x38] sm:$0xff]  }
   0x7   :  { %457 = vmatpush3.bf16.msra.mxu0 %v503_v1  ;;  %476 = vmatprep.subr.bf16.mxu1 %v513_v11  ;;  %v640_v61 = vld [vmem:[%s671_s3] sm:$0xff]  ;;  %v646_v62 = vld [vmem:[%s671_s3 + $0x10] sm:$0xff]  ;;  %v652_v63 = vld [vmem:[%s671_s3 + $0x8] sm:$0xff] }
   0x8   :  { %458 = vmatprep.subr.bf16.mxu0 %v504_v2  ;;  %vm352_vm4 = vcmp.ge.s32.totalorder %v640_v61, 0  ;;  %vm353_vm5 = vcmp.ge.s32.totalorder %v652_v63, 0  ;;  %vm354_vm6 = vcmp.ge.s32.totalorder %v646_v62, 0 }
   0xa   :  { %477 = vmatpush3.bf16.msra.mxu1 %v513_v11 }
   0xb   :  { %459 = vmatpush3.bf16.msra.mxu0 %v504_v2  ;;  %478 = vmatprep.subr.bf16.mxu1 %v514_v12 }
   0xc   :  { %460 = vmatprep.subr.bf16.mxu0 %v505_v3 }
   0xe   :  { %479 = vmatpush3.bf16.msra.mxu1 %v514_v12 }
   0xf   :  { %461 = vmatpush3.bf16.msra.mxu0 %v505_v3  ;;  %480 = vmatprep.subr.bf16.mxu1 %v515_v13 }
  0x10   :  { %462 = vmatprep.subr.bf16.mxu0 %v506_v5 }
  0x12   :  { %481 = vmatpush3.bf16.msra.mxu1 %v515_v13 }
  0x13   :  { %463 = vmatpush3.bf16.msra.mxu0 %v506_v5  ;;  %482 = vmatprep.subr.bf16.mxu1 %v516_v14 }
  0x14   :  { %464 = vmatprep.subr.bf16.mxu0 %v507_v6 }
  0x16   :  { %483 = vmatpush3.bf16.msra.mxu1 %v516_v14 }
  0x17   :  { %465 = vmatpush3.bf16.msra.mxu0 %v507_v6  ;;  %484 = vmatprep.subr.bf16.mxu1 %v517_v15 }
  0x18   :  { %466 = vmatprep.subr.bf16.mxu0 %v508_v7 }
  0x1a   :  { %485 = vmatpush3.bf16.msra.mxu1 %v517_v15 }
  0x1b   :  { %467 = vmatpush3.bf16.msra.mxu0 %v508_v7  ;;  %486 = vmatprep.subr.bf16.mxu1 %v518_v16 }
  0x1c   :  { %468 = vmatprep.subr.bf16.mxu0 %v509_v8 }
  0x1e   :  { %487 = vmatpush3.bf16.msra.mxu1 %v518_v16 }
  0x1f   :  { %469 = vmatpush3.bf16.msra.mxu0 %v509_v8  ;;  %488 = vmatprep.subr.bf16.mxu1 %v519_v17 }
  0x22   :  { %471 = vmatmul.mubr.bf16.vlgmr.msra.gmra.mrb[0].mxu0 %v511_v9  ;;  %489 = vmatpush3.bf16.msra.mxu1 %v519_v17 }
  0xf5   :  { %v472_v18 = vpop.f32.mrb[0].mxu0 }
  0xf6   :  { %v147_v19 = vmul.f32 %v472_v18, %v472_v18  ;;  %v131_v20 = vpop.f32.mrb[1].mxu0 }
  0xf7   :  { %v145_v21 = vmul.f32 %v131_v20, %v131_v20  ;;  %v473_v22 = vpop.f32.mrb[2].mxu0 }
  0xf8   :  { %v150_v23 = vmul.f32 %v472_v18, %v147_v19  ;;  %v134_v24 = vpop.f32.mrb[3].mxu0 }
  0xf9   :  { %v148_v25 = vmul.f32 %v145_v21, %v131_v20  ;;  %v146_v26 = vmul.f32 %v134_v24, %v134_v24 }
  0xfa   :  { %v153_v27 = vmul.f32 0.044715, %v150_v23 }
  0xfb   :  { %v151_v28 = vmul.f32 0.044715, %v148_v25  ;;  %v149_v29 = vmul.f32 %v146_v26, %v134_v24 }
  0xfc   :  { %v156_v30 = vadd.f32 %v472_v18, %v153_v27 }
  0xfd   :  { %v154_v31 = vadd.f32 %v151_v28, %v131_v20  ;;  %v152_v32 = vmul.f32 0.044715, %v149_v29 }
  0xfe   :  { %v159_v33 = vmul.f32 0.7978846, %v156_v30 }
  0xff   :  { %v157_v34 = vmul.f32 0.7978846, %v154_v31  ;;  %v155_v35 = vadd.f32 %v152_v32, %v134_v24  ;;  %v539_v32 = vmov 0.0  }
 0x100   :  { %520 = vtanh.f32 %v159_v33  ;;  %v431_v33 = vsel %vm352_vm4, 1.0, %v539_v32 }
 0x101   :  { %522 = vtanh.f32 %v157_v34  ;;  %v158_v36 = vmul.f32 0.7978846, %v155_v35  ;;  %v432_v34 = vsel %vm353_vm5, 1.0, %v539_v32 }
 0x103   :  { %524 = vtanh.f32 %v158_v36 }
 0x10a   :  { %v521_v37 = vpop.eup %520 }
 0x10b   :  { %v523_v38 = vpop.eup %522  ;;  %v165_v39 = vadd.f32 1.0, %v521_v37 }
 0x10c   :  { %v163_v40 = vadd.f32 1.0, %v523_v38 }
 0x10d   :  { %v525_v41 = vpop.eup %524  ;;  %v168_v42 = vmul.f32 0.5, %v165_v39 }
 0x10e   :  { %v164_v43 = vadd.f32 1.0, %v525_v41  ;;  %v166_v44 = vmul.f32 0.5, %v163_v40  ;;  %v379_v40 = vsel %vm358_vm7, %v431_v33, 0.0  ;;  %v380_v41 = vsel %vm358_vm7, %v432_v34, 0.0 }
 0x10f   :  { %v171_v46 = vmul.f32 %v472_v18, %v168_v42 }
 0x110   :  { %v167_v45 = vmul.f32 0.5, %v164_v43  ;;  %v169_v47 = vmul.f32 %v166_v44, %v131_v20  ;;  %v433_v44 = vsel %vm354_vm6, 1.0, %v539_v32 }
 0x111   :  { %v173_v50 = vpack.c.bf16 %v171_v46, %v171_v46 }
 0x112   :  { %v170_v48 = vmul.f32 %v167_v45, %v134_v24 }
 0x114   :  { %v172_v49 = vpack.c.bf16 %v170_v48, %v169_v47  ;;  %v381_v48 = vadd.f32 %v380_v41, %v379_v40 }
 0x116   :  { %490 = vmatprep.mubr.bf16.mxu1 %v172_v49 }
 0x117   :  { %491 = vmatmul.mubr.bf16.vlgmr.msra.gmra.mrb[0].mxu1 %v173_v50  ;;  %v382_v50 = vsel %vm358_vm7, %v433_v44, 0.0 }
 0x1ea   :  { %v492_v54 = vpop.f32.mrb[0].mxu1 }
 0x1eb   :  { %288 = vst [vmem:[%s670_s4 + $0x10] sm:$0xff] %v492_v54  ;;  %v272_v55 = vpop.f32.mrb[1].mxu1  ;;  %v294_v56 = vsel %vm291_vm0, %v492_v54, -1e+30 }
 0x1ec   :  { %286 = vst [vmem:[%s670_s4] sm:$0xff] %v272_v55  ;;  %299 = vmax.xlane.f32.xlu1 %v294_v56  ;;  %v493_v57 = vpop.f32.mrb[2].mxu1  ;;  %v292_v58 = vsel %vm291_vm0, %v272_v55, -1e+30 }
 0x1ed   :  { %295 = vmax.xlane.f32.xlu0 %v292_v58  ;;  %v275_v59 = vpop.f32.mrb[3].mxu1 }
 0x1ee   :  { %287 = vst [vmem:[%s670_s4 + $0x8] sm:$0xff] %v275_v59  ;;  %v293_v60 = vsel %vm291_vm0, %v275_v59, -1e+30 }
 0x1f1   :  { %297 = vmax.xlane.f32.xlu0 %v293_v60 }
 0x1fd   :  { %329 = vperm.xlu1 %500, %v640_v61  }
 0x201   :  { %335 = vperm.xlu1 %500, %v646_v62  }
 0x207   :  { %332 = vperm.xlu0 %501, %v652_v63  }
 0x279   :  { %v300_v0 = vpop.xlane.xlu1 %299 }
 0x27a   :  { %v303_v1 = vsub.f32 %v294_v56, %v300_v0  ;;  %v296_v2 = vpop.xlane.xlu0 %295 }
 0x27b   :  { %v301_v3 = vsub.f32 %v292_v58, %v296_v2 }
 0x27c   :  { %v308_v5 = vmul.f32 1.442695, %v303_v1 }
 0x27d   :  { %v304_v4 = vmul.f32 1.442695, %v301_v3  ;;  %v330_v10 = vpop.permute.xlu1 %329 }
 0x27e   :  { %v298_v6 = vpop.xlane.xlu0 %297  ;;  %vm337_vm1 = vcmp.eq.s32.totalorder %v625_v53, %v330_v10 }
 0x27f   :  { %526 = vpow2.f32 %v304_v4  ;;  %v302_v7 = vsub.f32 %v293_v60, %v298_v6  ;;  %v340_v14 = vsel %vm337_vm1, %v272_v55, 0.0 }
 0x280   :  { %528 = vpow2.f32 %v308_v5  ;;  %v394_v5 = vshrl.u32 %v289_v52, 7 }
 0x281   :  { %v306_v8 = vmul.f32 1.442695, %v302_v7  ;;  %v336_v15 = vpop.permute.xlu1 %335 }
 0x282   :  { %vm339_vm3 = vcmp.eq.s32.totalorder %v625_v53, %v336_v15  ;;  %vm395_vm8 = vcmp.eq.s32.totalorder %v394_v5, 0 }
 0x283   :  { %530 = vpow2.f32 %v306_v8  ;;  %v342_v17 = vsel %vm339_vm3, %v492_v54, 0.0  ;;  %v383_v54 = vadd.f32 %v382_v50, %v381_v48  ;;  %vm399_vm11 = vmand %vm395_vm8, %vm398_vm9 }
 0x284   :  { %vm397_vm12 = vmand %vm395_vm8, %vm396_vm10 }
 0x286   :  { %v333_v13 = vpop.permute.xlu0 %332 }
 0x287   :  { %vm338_vm2 = vcmp.eq.s32.totalorder %v625_v53, %v333_v13 }
 0x288   :  { %v341_v16 = vsel %vm338_vm2, %v275_v59, 0.0 }
 0x289   :  { %v527_v9 = vpop.eup %526 }
 0x28a   :  { %310 = vadd.xlane.f32.xlu1 %v527_v9  ;;  %v529_v11 = vpop.eup %528 }
 0x28d   :  { %v531_v12 = vpop.eup %530 }
 0x28e   :  { %314 = vadd.xlane.f32.xlu1 %v529_v11  ;;  %312 = vadd.xlane.f32.xlu0 %v531_v12 }
 0x292   :  { %343 = vadd.xlane.f32.xlu1 %v340_v14 }
 0x296   :  { %345 = vadd.xlane.f32.xlu1 %v341_v16 }
 0x29a   :  { %347 = vadd.xlane.f32.xlu1 %v342_v17 }
 0x317   :  { %v311_v18 = vpop.xlane.xlu1 %310 }
 0x318   :  { %532 = vlog2.f32 %v311_v18 }
 0x31b   :  { %v315_v19 = vpop.xlane.xlu1 %314  ;;  %v313_v20 = vpop.xlane.xlu0 %312 }
 0x31c   :  { %534 = vlog2.f32 %v315_v19 }
 0x31d   :  { %536 = vlog2.f32 %v313_v20 }
 0x31f   :  { %v344_v21 = vpop.xlane.xlu1 %343 }
 0x322   :  { %v533_v22 = vpop.eup %532 }
 0x323   :  { %v317_v23 = vmul.f32 0.6931472, %v533_v22  ;;  %v346_v24 = vpop.xlane.xlu1 %345 }
 0x325   :  { %v322_v25 = vadd.f32 %v317_v23, %v296_v2 }
 0x326   :  { %v535_v26 = vpop.eup %534 }
 0x327   :  { %v537_v27 = vpop.eup %536  ;;  %v321_v28 = vmul.f32 0.6931472, %v535_v26  ;;  %v349_v30 = vsub.f32 %v322_v25, %v344_v21  ;;  %v348_v36 = vpop.xlane.xlu1 %347 }
 0x328   :  { %v319_v29 = vmul.f32 0.6931472, %v537_v27 }
 0x329   :  { %v324_v31 = vadd.f32 %v321_v28, %v300_v0  ;;  %v355_v38 = vsel %vm352_vm4, %v349_v30, 0.0 }
 0x32a   :  { %v323_v35 = vadd.f32 %v319_v29, %v298_v6  ;;  %v359_v45 = vsel %vm358_vm7, %v355_v38, 0.0 }
 0x32b   :  { %v351_v37 = vsub.f32 %v324_v31, %v348_v36 }
 0x32c   :  { %v350_v39 = vsub.f32 %v323_v35, %v346_v24 }
 0x32d   :  { %v357_v43 = vsel %vm354_vm6, %v351_v37, 0.0 }
 0x32e   :  { %v356_v42 = vsel %vm353_vm5, %v350_v39, 0.0  ;;  %v362_v49 = vsel %vm358_vm7, %v357_v43, 0.0 }
 0x32f   :  { %v360_v46 = vsel %vm358_vm7, %v356_v42, 0.0 }
 0x330   :  { %v361_v47 = vadd.f32 %v360_v46, %v359_v45 }
 0x332   :  { %v363_v51 = vadd.f32 %v362_v49, %v361_v47 }
 0x334   :  { %364 = vadd.xlane.f32.xlu1 %v363_v51 }
 0x338   :  { %384 = vadd.xlane.f32.xlu1 %v383_v54 }
 0x3c1   :  { %v365_v55 = vpop.xlane.xlu1 %364 }
 0x3c2   :  { %v366_v56 = vrot.slane %v365_v55, 4 }
 0x3c4   :  { %v367_v57 = vadd.f32 %v366_v56, %v365_v55 }
 0x3c5   :  { %v385_v58 = vpop.xlane.xlu1 %384 }
 0x3c6   :  { %v368_v59 = vrot.slane %v367_v57, 2  ;;  %v386_v60 = vrot.slane %v385_v58, 4 }
 0x3c8   :  { %v387_v61 = vadd.f32 %v386_v60, %v385_v58  ;;  %v369_v62 = vadd.f32 %v368_v59, %v367_v57 }
 0x3ca   :  { %v388_v63 = vrot.slane %v387_v61, 2  ;;  %v370_v0 = vrot.slane %v369_v62, 1 }
 0x3cc   :  { %v389_v1 = vadd.f32 %v388_v63, %v387_v61  ;;  %v371_v2 = vadd.f32 %v370_v0, %v369_v62 }
 0x3ce   :  { %494 = vpush %v371_v2  ;;  %v390_v3 = vrot.slane %v389_v1, 1 }
 0x3d0   :  { %v391_v4 = vadd.f32 %v390_v3, %v389_v1 }
 0x3d2   :  { %496 = vpush %v391_v4 }
 0x3ff   :  { %s495_s3 = spop %494 }
 0x400   :  { %v402_v7 = vstv %s495_s3 }
 0x403   :  { %s497_s4 = spop %496 }
 0x404   :  { %v400_v6 = vstv %s497_s4 }
 0x405   :  { %v401_v8 = vsel %vm399_vm11, %v400_v6, 0.0 }
 0x406   :  { %v403_v9 = vsel %vm397_vm12, %v402_v7, %v401_v8 }
 0x407   :  { %404 = vst [vmem:[%s672_s5] sm:$0xff] %v403_v9 }

</bundles_post_ra>
